<compile_context>
chip_gen: v5e
topology: v5e:2x2
jax: 0.10.0
libtpu: 0.0.40
codegen_flags: <defaults>
</compile_context>

<pallas_src>
import jax
import jax.numpy as jnp
from jax.experimental import pallas as pl
from jax.experimental.pallas import tpu as pltpu


def moe_kernel(x_ref, wg_ref, bg_ref, wall_ref, be_ref, sel_ref, fold_ref, out_ref):
    # x_ref:    (tB, Din)          wg_ref:  (Din, E)        bg_ref:  (1, E)
    # wall_ref: (Din, E*Dout)      be_ref:  (E, Dout)
    # sel_ref:  (E, E*Dout)        fold_ref:(E*Dout, Dout)  out_ref: (tB, Dout)
    x = x_ref[...]
    xf = x.astype(jnp.float32)

    # ---- gate: small linear + numerically stable softmax (all f32) ----
    logits = jnp.dot(xf, wg_ref[...], preferred_element_type=jnp.float32) + bg_ref[...]
    logits = logits - jnp.max(logits, axis=-1, keepdims=True)
    p = jnp.exp(logits)
    gate = p / jnp.sum(p, axis=-1, keepdims=True)                       # (tB, E)

    # ---- all experts in one lane-dense MXU matmul ----
    y_all = jnp.dot(x.astype(wall_ref.dtype), wall_ref[...],
                    preferred_element_type=jnp.float32)                 # (tB, E*Dout)

    # ---- gated combine, kept on the MXU (no per-expert slicing / broadcasts) ----
    gate_exp = jnp.dot(gate, sel_ref[...],
                       preferred_element_type=jnp.float32)              # (tB, E*Dout)
    combined = jnp.dot(y_all * gate_exp, fold_ref[...],
                       preferred_element_type=jnp.float32)              # (tB, Dout)

    # ---- per-expert bias folded into one tiny matmul ----
    bias = jnp.dot(gate, be_ref[...], preferred_element_type=jnp.float32)  # (tB, Dout)

    out_ref[...] = (combined + bias).astype(out_ref.dtype)


def moe_layer(x, gate_w, gate_b, expert_w, expert_b, *,
              mxu_dtype=jnp.bfloat16, block_b=256):
    """x: (B, Din); gate_w: (Din, E); gate_b: (E,);
       expert_w: (E, Din, Dout) (stacked torch W_e^T); expert_b: (E, Dout)."""
    B, Din = x.shape
    E, _, Dout = expert_w.shape
    EDout = E * Dout

    # Pack expert weights lane-dense: W_all[k, e*Dout + d] = expert_w[e, k, d].
    w_all = jnp.transpose(expert_w, (1, 0, 2)).reshape(Din, EDout).astype(mxu_dtype)
    wg = gate_w.astype(jnp.float32)
    bg = gate_b.reshape(1, E).astype(jnp.float32)
    be = expert_b.astype(jnp.float32)

    # Constant 0/1 matrices that keep the gated combine on the MXU.
    col_e = jnp.arange(EDout)[None, :] // Dout
    sel = (jnp.arange(E)[:, None] == col_e).astype(jnp.float32)            # (E, E*Dout)
    fold = (jnp.arange(EDout)[:, None] % Dout
            == jnp.arange(Dout)[None, :]).astype(jnp.float32)              # (E*Dout, Dout)

    # Batch tiling. (8,128) rule: a block dim is fine if it equals the full array dim,
    # so a single full-batch block covers small B; larger B uses block_b-row tiles (+pad).
    if B <= block_b:
        tb, Bp = B, B
        x_in = x
    else:
        tb = block_b
        Bp = pl.cdiv(B, tb) * tb
        x_in = jnp.pad(x, ((0, Bp - B), (0, 0))) if Bp != B else x

    grid = (Bp // tb,)

    cost = pl.CostEstimate(
        flops=2 * Bp * Din * (EDout + E) + 2 * Bp * EDout * (E + Dout) + 2 * Bp * E * Dout,
        transcendentals=Bp * E,
        bytes_accessed=(x_in.size * x_in.dtype.itemsize
                        + w_all.size * w_all.dtype.itemsize
                        + wg.size * 4 + bg.size * 4 + be.size * 4
                        + sel.size * 4 + fold.size * 4
                        + Bp * Dout * x.dtype.itemsize),
    )

    out = pl.pallas_call(
        moe_kernel,
        out_shape=jax.ShapeDtypeStruct((Bp, Dout), x.dtype),
        grid=grid,
        in_specs=[
            pl.BlockSpec((tb, Din), lambda i: (i, 0)),        # x (batch-tiled)
            pl.BlockSpec((Din, E), lambda i: (0, 0)),         # gate weights (resident)
            pl.BlockSpec((1, E), lambda i: (0, 0)),           # gate bias
            pl.BlockSpec((Din, EDout), lambda i: (0, 0)),     # packed expert weights
            pl.BlockSpec((E, Dout), lambda i: (0, 0)),        # expert biases
            pl.BlockSpec((E, EDout), lambda i: (0, 0)),       # gate-expand matrix
            pl.BlockSpec((EDout, Dout), lambda i: (0, 0)),    # fold matrix
        ],
        out_specs=pl.BlockSpec((tb, Dout), lambda i: (i, 0)),
        compiler_params=pltpu.CompilerParams(
            dimension_semantics=("parallel",),     # shard batch tiles across TCs (v7x)
            vmem_limit_bytes=32 * 1024 * 1024,     # > v5e 16 MiB default, <= v7x 64 MiB
        ),
        cost_estimate=cost,
    )(x_in, wg, bg, w_all, be, sel, fold)

    return out[:B] if Bp != B else out


def moe_reference(x, gate_w, gate_b, expert_w, expert_b):
    gate = jax.nn.softmax(x @ gate_w + gate_b, axis=-1)                     # (B, E)
    outs = jnp.einsum("bi,eio->beo", x, expert_w) + expert_b[None]          # (B, E, Dout)
    return jnp.einsum("be,beo->bo", gate, outs)


if __name__ == "__main__":
    # Small shapes implied by the module: input_dim=32, output_dim=32, num_experts=4, batch=8.
    B, Din, Dout, E = 8, 32, 32, 4

    key = jax.random.PRNGKey(0)
    k1, k2, k3, k4, k5 = jax.random.split(key, 5)
    x = jax.random.normal(k1, (B, Din), dtype=jnp.float32)
    gate_w = jax.random.normal(k2, (Din, E), dtype=jnp.float32) * 0.1        # = gate.weight.T
    gate_b = jax.random.normal(k3, (E,), dtype=jnp.float32) * 0.1
    expert_w = jax.random.normal(k4, (E, Din, Dout), dtype=jnp.float32) * 0.1  # = W_e.T stacked
    expert_b = jax.random.normal(k5, (E, Dout), dtype=jnp.float32) * 0.1

    ref = moe_reference(x, gate_w, gate_b, expert_w, expert_b)

    # f32 MXU operands: strict check against the reference.
    out_f32 = jax.block_until_ready(
        moe_layer(x, gate_w, gate_b, expert_w, expert_b, mxu_dtype=jnp.float32))
    assert out_f32.shape == (B, Dout)
    assert jnp.allclose(out_f32, ref, atol=1e-4, rtol=1e-4), "f32 mismatch vs reference"

    # bf16 MXU operands (performance default): loose check against the f32 reference.
    out_bf16 = jax.block_until_ready(
        moe_layer(x, gate_w, gate_b, expert_w, expert_b, mxu_dtype=jnp.bfloat16))
    assert out_bf16.shape == (B, Dout)
    assert jnp.allclose(out_bf16, ref, atol=5e-2, rtol=5e-2), "bf16 mismatch vs reference"

    # Larger batch to exercise the batch grid (block_b-row tiles + padding path).
    B2 = 600
    x2 = jax.random.normal(jax.random.PRNGKey(1), (B2, Din), dtype=jnp.float32)
    ref2 = moe_reference(x2, gate_w, gate_b, expert_w, expert_b)
    out2 = jax.block_until_ready(
        moe_layer(x2, gate_w, gate_b, expert_w, expert_b, mxu_dtype=jnp.float32))
    assert out2.shape == (B2, Dout)
    assert jnp.allclose(out2, ref2, atol=1e-4, rtol=1e-4), "gridded-batch mismatch vs reference"

    print("KERNEL_OK")
</pallas_src>

<mosaic_0001>
module attributes {stable_mosaic.version = 11 : i64} {
  func.func @moe_kernel(%arg0: i32, %arg1: memref<8x32xf32, #tpu.memory_space<vmem>>, %arg2: memref<32x4xf32, #tpu.memory_space<vmem>>, %arg3: memref<1x4xf32, #tpu.memory_space<vmem>>, %arg4: memref<32x128xf32, #tpu.memory_space<vmem>>, %arg5: memref<4x32xf32, #tpu.memory_space<vmem>>, %arg6: memref<4x128xf32, #tpu.memory_space<vmem>>, %arg7: memref<128x32xf32, #tpu.memory_space<vmem>>, %arg8: memref<8x32xf32, #tpu.memory_space<vmem>>) attributes {dimension_semantics = [#tpu.dimension_semantics<parallel>], iteration_bounds = array<i64: 1>, scalar_prefetch = 0 : i64, scratch_operands = 0 : i64, tpu.core_type = #tpu.core_type<tc>, window_params = [{transform_indices = @transform_0, window_bounds = array<i64: 8, 32>}, {pipeline_mode = #tpu.pipeline_mode<synchronous>, transform_indices = @transform_1, window_bounds = array<i64: 32, 4>}, {pipeline_mode = #tpu.pipeline_mode<synchronous>, transform_indices = @transform_2, window_bounds = array<i64: 1, 4>}, {pipeline_mode = #tpu.pipeline_mode<synchronous>, transform_indices = @transform_3, window_bounds = array<i64: 32, 128>}, {pipeline_mode = #tpu.pipeline_mode<synchronous>, transform_indices = @transform_4, window_bounds = array<i64: 4, 32>}, {pipeline_mode = #tpu.pipeline_mode<synchronous>, transform_indices = @transform_5, window_bounds = array<i64: 4, 128>}, {pipeline_mode = #tpu.pipeline_mode<synchronous>, transform_indices = @transform_6, window_bounds = array<i64: 128, 32>}, {transform_indices = @transform_7, window_bounds = array<i64: 8, 32>}]} {
    %c0 = arith.constant 0 : index
    %c0_0 = arith.constant 0 : index
    %0 = vector.load %arg1[%c0, %c0_0] : memref<8x32xf32, #tpu.memory_space<vmem>>, vector<8x32xf32>
    %c0_1 = arith.constant 0 : index
    %c0_2 = arith.constant 0 : index
    %1 = vector.load %arg2[%c0_1, %c0_2] : memref<32x4xf32, #tpu.memory_space<vmem>>, vector<32x4xf32>
    %cst = arith.constant dense<0.000000e+00> : vector<8x4xf32>
    %2 = tpu.matmul %0, %1, %cst {dimension_numbers = #tpu.dot_dimension_numbers<[1], [0], [0], [1], [0, 0, 1, 1], [], []>} : vector<8x32xf32>, vector<32x4xf32>, vector<8x4xf32> -> vector<8x4xf32>
    %c0_3 = arith.constant 0 : index
    %c0_4 = arith.constant 0 : index
    %3 = vector.load %arg3[%c0_3, %c0_4] : memref<1x4xf32, #tpu.memory_space<vmem>>, vector<1x4xf32>
    %4 = vector.broadcast %3 : vector<1x4xf32> to vector<8x4xf32>
    %5 = arith.addf %2, %4 : vector<8x4xf32>
    %cst_5 = arith.constant dense<0xFF800000> : vector<8xf32>
    %6 = vector.multi_reduction <maximumf>, %5, %cst_5 [1] : vector<8x4xf32> to vector<8xf32>
    %7 = vector.shape_cast %6 : vector<8xf32> to vector<8x1xf32>
    %8 = vector.broadcast %7 : vector<8x1xf32> to vector<8x4xf32>
    %9 = arith.subf %5, %8 : vector<8x4xf32>
    %10 = math.exp %9 : vector<8x4xf32>
    %cst_6 = arith.constant dense<0.000000e+00> : vector<8xf32>
    %11 = vector.multi_reduction <add>, %10, %cst_6 [1] : vector<8x4xf32> to vector<8xf32>
    %12 = vector.shape_cast %11 : vector<8xf32> to vector<8x1xf32>
    %13 = vector.broadcast %12 : vector<8x1xf32> to vector<8x4xf32>
    %14 = arith.divf %10, %13 : vector<8x4xf32>
    %c0_7 = arith.constant 0 : index
    %c0_8 = arith.constant 0 : index
    %15 = vector.load %arg4[%c0_7, %c0_8] : memref<32x128xf32, #tpu.memory_space<vmem>>, vector<32x128xf32>
    %cst_9 = arith.constant dense<0.000000e+00> : vector<8x128xf32>
    %16 = tpu.matmul %0, %15, %cst_9 {dimension_numbers = #tpu.dot_dimension_numbers<[1], [0], [0], [1], [0, 0, 1, 1], [], []>} : vector<8x32xf32>, vector<32x128xf32>, vector<8x128xf32> -> vector<8x128xf32>
    %c0_10 = arith.constant 0 : index
    %c0_11 = arith.constant 0 : index
    %17 = vector.load %arg6[%c0_10, %c0_11] : memref<4x128xf32, #tpu.memory_space<vmem>>, vector<4x128xf32>
    %cst_12 = arith.constant dense<0.000000e+00> : vector<8x128xf32>
    %18 = tpu.matmul %14, %17, %cst_12 {dimension_numbers = #tpu.dot_dimension_numbers<[1], [0], [0], [1], [0, 0, 1, 1], [], []>} : vector<8x4xf32>, vector<4x128xf32>, vector<8x128xf32> -> vector<8x128xf32>
    %19 = arith.mulf %16, %18 : vector<8x128xf32>
    %c0_13 = arith.constant 0 : index
    %c0_14 = arith.constant 0 : index
    %20 = vector.load %arg7[%c0_13, %c0_14] : memref<128x32xf32, #tpu.memory_space<vmem>>, vector<128x32xf32>
    %cst_15 = arith.constant dense<0.000000e+00> : vector<8x32xf32>
    %21 = tpu.matmul %19, %20, %cst_15 {dimension_numbers = #tpu.dot_dimension_numbers<[1], [0], [0], [1], [0, 0, 1, 1], [], []>} : vector<8x128xf32>, vector<128x32xf32>, vector<8x32xf32> -> vector<8x32xf32>
    %c0_16 = arith.constant 0 : index
    %c0_17 = arith.constant 0 : index
    %22 = vector.load %arg5[%c0_16, %c0_17] : memref<4x32xf32, #tpu.memory_space<vmem>>, vector<4x32xf32>
    %cst_18 = arith.constant dense<0.000000e+00> : vector<8x32xf32>
    %23 = tpu.matmul %14, %22, %cst_18 {dimension_numbers = #tpu.dot_dimension_numbers<[1], [0], [0], [1], [0, 0, 1, 1], [], []>} : vector<8x4xf32>, vector<4x32xf32>, vector<8x32xf32> -> vector<8x32xf32>
    %24 = arith.addf %21, %23 : vector<8x32xf32>
    %c0_19 = arith.constant 0 : index
    %c0_20 = arith.constant 0 : index
    %25 = vector.load %arg8[%c0_19, %c0_20] : memref<8x32xf32, #tpu.memory_space<vmem>>, vector<8x32xf32>
    tpu.vector_store %arg8[%c0_19, %c0_20], %24 {strides = array<i32>} : memref<8x32xf32, #tpu.memory_space<vmem>>, vector<8x32xf32>,
    return
  }
  func.func @transform_0(%arg0: i32) -> (i32, i32) {
    %c0_i32 = arith.constant 0 : i32
    %c0_i32_0 = arith.constant 0 : i32
    return %arg0, %c0_i32 : i32, i32
  }
  func.func @transform_1(%arg0: i32) -> (i32, i32) {
    %c0_i32 = arith.constant 0 : i32
    %c0_i32_0 = arith.constant 0 : i32
    %c0_i32_1 = arith.constant 0 : i32
    return %c0_i32, %c0_i32_0 : i32, i32
  }
  func.func @transform_2(%arg0: i32) -> (i32, i32) {
    %c0_i32 = arith.constant 0 : i32
    %c0_i32_0 = arith.constant 0 : i32
    %c0_i32_1 = arith.constant 0 : i32
    return %c0_i32, %c0_i32_0 : i32, i32
  }
  func.func @transform_3(%arg0: i32) -> (i32, i32) {
    %c0_i32 = arith.constant 0 : i32
    %c0_i32_0 = arith.constant 0 : i32
    %c0_i32_1 = arith.constant 0 : i32
    return %c0_i32, %c0_i32_0 : i32, i32
  }
  func.func @transform_4(%arg0: i32) -> (i32, i32) {
    %c0_i32 = arith.constant 0 : i32
    %c0_i32_0 = arith.constant 0 : i32
    %c0_i32_1 = arith.constant 0 : i32
    return %c0_i32, %c0_i32_0 : i32, i32
  }
  func.func @transform_5(%arg0: i32) -> (i32, i32) {
    %c0_i32 = arith.constant 0 : i32
    %c0_i32_0 = arith.constant 0 : i32
    %c0_i32_1 = arith.constant 0 : i32
    return %c0_i32, %c0_i32_0 : i32, i32
  }
  func.func @transform_6(%arg0: i32) -> (i32, i32) {
    %c0_i32 = arith.constant 0 : i32
    %c0_i32_0 = arith.constant 0 : i32
    %c0_i32_1 = arith.constant 0 : i32
    return %c0_i32, %c0_i32_0 : i32, i32
  }
  func.func @transform_7(%arg0: i32) -> (i32, i32) {
    %c0_i32 = arith.constant 0 : i32
    %c0_i32_0 = arith.constant 0 : i32
    return %arg0, %c0_i32 : i32, i32
  }
}

</mosaic_0001>

<bundles_post_ra>
// kernel: tpu_custom_call.1
= control target key start
LH: loop header
LB: loop body
LE: loop exit
PB: predicated region body
PF: predicated region fallthrough
CT: control target
= control target key end

     0   :  { %s388_s0 = inlined_call_operand.vmem [shape: f32[8,32], index: 0, kind: input, shape index: {}]   ;;  %s389_s1 = inlined_call_operand.vmem [shape: f32[32,4], index: 1, kind: input, shape index: {}]   ;;  %s390_s2 = inlined_call_operand.vmem [shape: f32[1,4], index: 2, kind: input, shape index: {}]   ;;  %s391_s3 = inlined_call_operand.vmem [shape: f32[32,128], index: 3, kind: input, shape index: {}]   ;;  %s392_s4 = inlined_call_operand.vmem [shape: f32[4,32], index: 4, kind: input, shape index: {}]   ;;  %s393_s5 = inlined_call_operand.vmem [shape: f32[4,128], index: 5, kind: input, shape index: {}]   ;;  %s394_s6 = inlined_call_operand.vmem [shape: f32[128,32], index: 6, kind: input, shape index: {}]   ;;  %s395_s7 = inlined_call_operand.hbm [shape: f32[8,32], index: 7, kind: output, shape index: {}]  }
   0x1   :  { %v31_v0 = vld [vmem:[%s389_s1 + $0x18] sm:$0xff]  ;;  %v30_v1 = vld [vmem:[%s389_s1 + $0x10] sm:$0xff]  ;;  %v29_v2 = vld [vmem:[%s389_s1 + $0x8] sm:$0xff] }
   0x2   :  { %52 = vmatpush.msra.mxu0 %v31_v0 }
   0x3   :  { %12 = vsyncpa [#allocation3], 0  ;;  %v28_v3 = vld [vmem:[%s389_s1] sm:$0xff]  ;;  %vm36_vm0 = vcmask 261120   ;;  %vm60_vm1 = vcmask 31744   ;;  %v88_v14 = vld [vmem:[%s391_s3 + $0x18] sm:$0xff] }
   0x4   :  { %53 = vmatpush.msra.mxu0 %v30_v1  ;;  %v27_v4 = vld [vmem:[%s388_s0] sm:$0xff]  ;;  %vm113_vm2 = vcmask 1043456   ;;  %101 = vmatpush.msra.mxu1 %v88_v14  ;;  %v87_v16 = vld [vmem:[%s391_s3 + $0x10] sm:$0xff]  ;;  %v86_v17 = vld [vmem:[%s391_s3 + $0x8] sm:$0xff]  ;;  %s253_s24 = smov [#allocation2]   ;;  %s206_s26 = sshll.u32 %s395_s7, 4  ;;  %s207_s26 = int_to_ptr.hbm [resolvable:$true] %s206_s26 }
   0x5   :  { %v222_v5 = vld [vmem:[%s390_s2] ss:$0 sm:$0xff]  ;;  %v153_v20 = vld [vmem:[%s394_s6 + $0x78] sm:$0xff]  ;;  %v152_v21 = vld [vmem:[%s394_s6 + $0x70] sm:$0xff]  ;;  %s204_s25 = sshll.u32 %s253_s24, 4  ;;  %s205_s25 = int_to_ptr.vmem [resolvable:$true] %s204_s25 }
   0x6   :  { %54 = vmatpush.msra.mxu0 %v29_v2  ;;  %v109_v15 = vld [vmem:[%s393_s5] sm:$0xf]  ;;  %102 = vmatpush.msra.mxu1 %v87_v16  ;;  %v151_v22 = vld [vmem:[%s394_s6 + $0x68] sm:$0xff]  ;;  %v149_v25 = vld [vmem:[%s394_s6 + $0x58] sm:$0xff] }
   0x7   :  { %217 = vmatpush.msk.msra.mxu3 %vm113_vm2, %v109_v15  ;;  %v154_v18 = vld [vmem:[%s392_s4] sm:$0xf]  ;;  %178 = vmatpush.msra.mxu2 %v153_v20  ;;  %v148_v26 = vld [vmem:[%s394_s6 + $0x50] sm:$0xff]  ;;  %v147_v27 = vld [vmem:[%s394_s6 + $0x48] sm:$0xff] }
   0x8   :  { %55 = vmatpush.msra.mxu0 %v28_v3  ;;  %v85_v19 = vld [vmem:[%s391_s3] sm:$0xff]  ;;  %103 = vmatpush.msra.mxu1 %v86_v17  ;;  %v145_v32 = vld [vmem:[%s394_s6 + $0x38] sm:$0xff]  ;;  %v144_v36 = vld [vmem:[%s394_s6 + $0x30] sm:$0xff] }
   0x9   :  { %215 = vmatmul.msk.f32.vlgmr.msra.gmra.mxu0 %vm36_vm0, %v27_v4  ;;  %219 = vmatpush.msk.msrb.mxu3 %vm113_vm2, %v154_v18  ;;  %v150_v24 = vld [vmem:[%s394_s6 + $0x60] sm:$0xff]  ;;  %v143_v38 = vld [vmem:[%s394_s6 + $0x28] sm:$0xff]  ;;  %v141_v44 = vld [vmem:[%s394_s6 + $0x18] sm:$0xff] }
   0xa   :  { %104 = vmatpush.msra.mxu1 %v85_v19  ;;  %179 = vmatpush.msra.mxu2 %v152_v21  ;;  %v146_v30 = vld [vmem:[%s394_s6 + $0x40] sm:$0xff]  ;;  %v140_v45 = vld [vmem:[%s394_s6 + $0x10] sm:$0xff]  ;;  %v139_v46 = vld [vmem:[%s394_s6 + $0x8] sm:$0xff] }
   0xb   :  { %216 = vmatmul.msk.f32.vlgmr.msra.gmra.mxu1 %vm36_vm0, %v27_v4  ;;  %v142_v41 = vld [vmem:[%s394_s6 + $0x20] sm:$0xff] }
   0xc   :  { %180 = vmatpush.msra.mxu2 %v151_v22  ;;  %v138_v47 = vld [vmem:[%s394_s6] sm:$0xff] }
   0xe   :  { %181 = vmatpush.msra.mxu2 %v150_v24 }
  0x10   :  { %182 = vmatpush.msra.mxu2 %v149_v25 }
  0x12   :  { %183 = vmatpush.msra.mxu2 %v148_v26 }
  0x14   :  { %184 = vmatpush.msra.mxu2 %v147_v27 }
  0x16   :  { %185 = vmatpush.msra.mxu2 %v146_v30 }
  0x18   :  { %186 = vmatpush.msra.mxu2 %v145_v32 }
  0x1a   :  { %187 = vmatpush.msra.mxu2 %v144_v36 }
  0x1c   :  { %188 = vmatpush.msra.mxu2 %v143_v38 }
  0x1e   :  { %189 = vmatpush.msra.mxu2 %v142_v41 }
  0x20   :  { %190 = vmatpush.msra.mxu2 %v141_v44 }
  0x22   :  { %191 = vmatpush.msra.mxu2 %v140_v45 }
  0x24   :  { %192 = vmatpush.msra.mxu2 %v139_v46 }
  0x26   :  { %193 = vmatpush.msra.mxu2 %v138_v47 }
  0x86   :  { %v57_v6 = vpop.f32.mrf.mxu0 }
  0x87   :  { %v58_v7 = vadd.f32 %v222_v5, %v57_v6 }
  0x88   :  { %v106_v48 = vpop.f32.mrf.mxu1 }
  0x89   :  { %v61_v8 = vsel %vm60_vm1, %v58_v7, -inf }
  0x8a   :  { %62 = vmax.xlane.f32.xlu0 %v61_v8 }
  0xfd   :  { %v63_v9 = vpop.xlane.xlu0 %62 }
  0xfe   :  { %v64_v10 = vsub.f32 %v58_v7, %v63_v9 }
 0x100   :  { %v65_v11 = vmul.f32 1.442695, %v64_v10 }
 0x102   :  { %223 = vpow2.f32 %v65_v11 }
 0x108   :  { %v224_v12 = vpop.eup %223 }
 0x109   :  { %v67_v13 = vsel %vm60_vm1, %v224_v12, 0.0 }
 0x10a   :  { %68 = vadd.xlane.f32.xlu0 %v67_v13 }
 0x17d   :  { %v69_v23 = vpop.xlane.xlu0 %68 }
 0x17e   :  { %225 = vrcp.f32 %v69_v23  ;;  %v81_v33 = vand.u32 2147483648, %v69_v23  ;;  %v79_v35 = vand.u32 2147483647, %v69_v23  ;;  %vm75_vm4 = vweird.f32 %v69_v23 }
 0x180   :  { %v82_v39 = vor.u32 1.1754944e-38, %v81_v33  ;;  %vm80_vm6 = vcmp.eq.f32.partialorder %v79_v35, 8.507059e+37 }
 0x184   :  { %v226_v28 = vpop.eup %225 }
 0x185   :  { %v71_v29 = vmul.f32 %v226_v28, %v69_v23  ;;  %vm76_vm3 = vweird.f32 %v226_v28 }
 0x186   :  { %vm77_vm5 = vmor %vm75_vm4, %vm76_vm3 }
 0x187   :  { %v72_v31 = vsub.f32 1.0, %v71_v29 }
 0x189   :  { %v73_v34 = vmul.f32 %v226_v28, %v72_v31 }
 0x18b   :  { %v74_v37 = vadd.f32 %v226_v28, %v73_v34 }
 0x18d   :  { %v78_v40 = vsel %vm77_vm5, %v226_v28, %v74_v37 }
 0x18e   :  { %v83_v42 = vsel %vm80_vm6, %v82_v39, %v78_v40 }
 0x18f   :  { %v84_v43 = vmul.f32 %v224_v12, %v83_v42 }
 0x191   :  { %218 = vmatmul.msk.f32.vlgmr.msra.gmra.mxu3 %vm60_vm1, %v84_v43 }
 0x199   :  { %220 = vmatmul.msk.f32.vlgmr.msrb.gmra.mxu3 %vm60_vm1, %v84_v43 }
 0x214   :  { %v134_v49 = vpop.f32.mrf.mxu3 }
 0x215   :  { %v137_v50 = vmul.f32 %v134_v49, %v106_v48 }
 0x217   :  { %194 = vmatmul.f32.vlgmr.msra.gmra.mxu2 %v137_v50 }
 0x21c   :  { %v175_v51 = vpop.f32.mrf.mxu3 }
 0x29a   :  { %v195_v52 = vpop.f32.mrf.mxu2 }
 0x29b   :  { %v196_v53 = vadd.f32 %v195_v52, %v175_v51 }
 0x29d   :  { %198 = vst.msk [vmem:[#allocation2] sm:$0xff] %vm36_vm0, %v196_v53 }
 0x29e   :  { %209 = dma.vmem_to_hbm [thread:$0]  %s205_s25, 128, %s207_s26, [#allocation3]  }
 0x29f   :  { %251 = dma.done.wait [#allocation3], 128  }
 0x2a0   :  { %252 = vsyncadd [#allocation3], 4294967168 }
 0x2a1   :  { %214 = vsyncpa [#allocation3], 1 }

</bundles_post_ra>
